<compile_context>
chip_gen: v7x
topology: tpu7x:2x2x1
jax: 0.10.0
libtpu: 0.0.40
codegen_flags: <defaults>
</compile_context>

<pallas_src>
import functools

import jax
import jax.numpy as jnp
from jax.experimental import pallas as pl
from jax.experimental.pallas import tpu as pltpu


def _round_up(a, b):
    return ((a + b - 1) // b) * b


def _softplus(x):
    # Numerically stable softplus: max(x, 0) + log1p(exp(-|x|))
    return jnp.maximum(x, 0.0) + jnp.log1p(jnp.exp(-jnp.abs(x)))


def _router_kernel(x_ref, w_ref, b_ref, noise_ref, out_ref, idx_ref, *,
                   top_k, num_experts, half):
    # x arrives in its native dtype; cast to bf16 right before the MXU matmul.
    x = x_ref[...].astype(jnp.bfloat16)              # (TM, K)
    w = w_ref[...]                                   # (K, 2*half) bf16 (route | noise)

    # Single fused MXU matmul for both linears, f32 accumulation.
    fused = jnp.dot(x, w, preferred_element_type=jnp.float32)   # (TM, 2*half)

    # Narrow, lane-aligned slices (route half starts at 0, noise half at `half`).
    logits = fused[:, :num_experts] + b_ref[:, :num_experts]                  # (TM, E)
    noise_logits = fused[:, half:half + num_experts] + b_ref[:, half:half + num_experts]

    gauss = noise_ref[...].astype(jnp.float32)        # (TM, E) external randn stream
    noisy = logits + gauss * _softplus(noise_logits)  # (TM, E)

    col = jax.lax.broadcasted_iota(jnp.int32, noisy.shape, 1)    # (TM, E)
    neg_inf = jnp.float32(-jnp.inf)

    # Iterative top-k: one row-max + one first-argmax reduce per step; only the
    # selected lane is masked for the next step (skipped on the last step).
    masked = noisy
    top_vals = []
    top_idx = []
    for k in range(top_k):
        vmax = jnp.max(masked, axis=-1, keepdims=True)                     # (TM, 1)
        is_max = masked == vmax
        idx = jnp.min(jnp.where(is_max, col, num_experts),
                      axis=-1, keepdims=True).astype(jnp.int32)            # (TM, 1)
        top_vals.append(vmax)
        top_idx.append(idx)
        if k + 1 < top_k:
            masked = jnp.where(col == idx, neg_inf, masked)

    # Softmax over just the top_k scalars. top_vals[0] is the global row max,
    # so exp(top_vals[0] - max) == 1 exactly. Exact divide keeps rows summing to 1.
    exps = [jnp.ones_like(top_vals[0])]
    for k in range(1, top_k):
        exps.append(jnp.exp(top_vals[k] - top_vals[0]))
    denom = exps[0]
    for k in range(1, top_k):
        denom = denom + exps[k]
    inv = 1.0 / denom                                                       # (TM, 1)

    # Scatter the top_k probabilities into the narrow (TM, E) output.
    out = jnp.zeros(noisy.shape, jnp.float32)
    for k in range(top_k):
        out = jnp.where(col == top_idx[k], exps[k] * inv, out)

    out_ref[...] = out
    idx_ref[...] = jnp.concatenate(top_idx, axis=-1)                        # (TM, top_k)


def pack_router_params(w_route, b_route, w_noise, b_noise):
    """Pack the two router linears into one fused, lane-aligned weight/bias.

    Call ONCE at parameter-init time (hoisted out of the per-step path):
    route weights live in fused columns [0, E), noise weights in [Hp, Hp+E),
    where Hp = round_up(E, 128) so the noise half starts on a vreg boundary.
    """
    E, K = w_route.shape
    Hp = _round_up(E, 128)
    w_fused = jnp.zeros((K, 2 * Hp), jnp.float32)
    w_fused = w_fused.at[:, :E].set(w_route.T).at[:, Hp:Hp + E].set(w_noise.T)
    w_fused = w_fused.astype(jnp.bfloat16)
    b_fused = jnp.zeros((1, 2 * Hp), jnp.float32)
    b_fused = b_fused.at[0, :E].set(b_route).at[0, Hp:Hp + E].set(b_noise)
    return w_fused, b_fused, E


def noisy_topk_router(x, noise, w_fused, b_fused, num_experts, *,
                      top_k, tile_m=512):
    """x: (B, T, n_embed); noise: (B, T, E) ~ N(0, 1) (== torch.randn_like(logits)).

    Returns (router_output (B, T, E) f32, indices (B, T, top_k) i32).
    """
    B, T, K = x.shape
    E = int(num_experts)
    Hp = w_fused.shape[1] // 2
    assert top_k <= E, "top_k must not exceed the number of experts"
    N = B * T

    # Adaptive token tile: large (amortize ~0.35us/step), multiple of 8 sublanes,
    # shrunk if the per-step VMEM footprint would exceed the v7x 64 MiB budget.
    tm = _round_up(min(tile_m, _round_up(N, 8)), 8)

    def footprint(t):
        ins = 2 * (t * K * 4 + t * E * 4) + 2 * (K * 2 * Hp * 2 + 2 * Hp * 4)
        outs = 2 * (t * E * 4 + t * top_k * 4)
        work = 6 * t * 2 * Hp * 4       # fused result + a few live intermediates
        return ins + outs + work

    while tm > 128 and footprint(tm) > 40 * 1024 * 1024:
        tm = max(8, _round_up(tm // 2, 8))
    n_pad = _round_up(N, tm)

    x2 = x.reshape(N, K)                              # native dtype, no bf16 round-trip
    nz = noise.reshape(N, E).astype(jnp.float32)
    if n_pad != N:                                    # pad tokens only when needed
        x2 = jnp.pad(x2, ((0, n_pad - N), (0, 0)))
        nz = jnp.pad(nz, ((0, n_pad - N), (0, 0)))

    kernel = functools.partial(_router_kernel, top_k=top_k, num_experts=E, half=Hp)
    vmem_limit = int(min(64 * 1024 * 1024, max(2 * footprint(tm), 8 * 1024 * 1024)))

    out, idx = pl.pallas_call(
        kernel,
        out_shape=(
            jax.ShapeDtypeStruct((n_pad, E), jnp.float32),        # narrow probs
            jax.ShapeDtypeStruct((n_pad, top_k), jnp.int32),      # top-k indices
        ),
        grid_spec=pltpu.PrefetchScalarGridSpec(
            num_scalar_prefetch=0,
            grid=(n_pad // tm,),
            in_specs=[
                pl.BlockSpec((tm, K), lambda i: (i, 0)),          # x tile (native dtype)
                pl.BlockSpec((K, 2 * Hp), lambda i: (0, 0)),      # fused weights (resident)
                pl.BlockSpec((1, 2 * Hp), lambda i: (0, 0)),      # fused biases (f32)
                pl.BlockSpec((tm, E), lambda i: (i, 0)),          # external randn stream
            ],
            out_specs=[
                pl.BlockSpec((tm, E), lambda i: (i, 0)),
                pl.BlockSpec((tm, top_k), lambda i: (i, 0)),
            ],
        ),
        compiler_params=pltpu.CompilerParams(
            dimension_semantics=("parallel",),        # shard token axis across TCs
            vmem_limit_bytes=vmem_limit,
        ),
    )(x2, w_fused, b_fused, nz)

    out = out[:N].reshape(B, T, E)
    idx = idx[:N].reshape(B, T, top_k)
    return out, idx


if __name__ == "__main__":
    # Small shapes consistent with the module: hidden=32, 8 experts, top_k=2.
    B, T, n_embed, num_experts, top_k = 2, 8, 32, 8, 2

    key = jax.random.PRNGKey(0)
    k_x, k_wr, k_br, k_wn, k_bn, k_noise = jax.random.split(key, 6)

    bound = 1.0 / (n_embed ** 0.5)
    w_route = jax.random.uniform(k_wr, (num_experts, n_embed), jnp.float32, -bound, bound)
    b_route = jax.random.uniform(k_br, (num_experts,), jnp.float32, -bound, bound)
    w_noise = jax.random.uniform(k_wn, (num_experts, n_embed), jnp.float32, -bound, bound)
    b_noise = jax.random.uniform(k_bn, (num_experts,), jnp.float32, -bound, bound)
    x = jax.random.normal(k_x, (B, T, n_embed), jnp.float32)
    # External standard-normal stream == torch.randn_like(logits).
    noise = jax.random.normal(k_noise, (B, T, num_experts), jnp.float32)

    # One-time parameter packing (hoisted out of the per-call path).
    w_fused, b_fused, E = pack_router_params(w_route, b_route, w_noise, b_noise)

    out, idx = noisy_topk_router(x, noise, w_fused, b_fused, E, top_k=top_k)
    jax.block_until_ready((out, idx))

    # Pure-JAX reference with the SAME noise stream and matching bf16-matmul precision.
    x2 = x.reshape(-1, n_embed).astype(jnp.bfloat16)
    logits_ref = jnp.dot(x2, w_route.T.astype(jnp.bfloat16),
                         preferred_element_type=jnp.float32) + b_route
    nlog_ref = jnp.dot(x2, w_noise.T.astype(jnp.bfloat16),
                       preferred_element_type=jnp.float32) + b_noise
    noisy_ref = logits_ref + noise.reshape(-1, num_experts) * jax.nn.softplus(nlog_ref)
    topv, topi = jax.lax.top_k(noisy_ref, top_k)
    sparse_ref = jax.vmap(lambda s, i, v: s.at[i].set(v))(
        jnp.full_like(noisy_ref, -jnp.inf), topi, topv)
    ref_out = jax.nn.softmax(sparse_ref, axis=-1)

    out2 = out.reshape(-1, num_experts)
    idx2 = idx.reshape(-1, top_k)

    assert out.shape == (B, T, num_experts) and idx.shape == (B, T, top_k)
    assert jnp.allclose(out2, ref_out, atol=2e-2), "router output mismatch vs reference"
    assert bool(jnp.all(jnp.sort(idx2, -1) == jnp.sort(topi, -1))), "top-k indices mismatch"
    assert bool(jnp.all(jnp.isfinite(out2)))
    assert jnp.allclose(out2.sum(-1), 1.0, atol=1e-3), "rows do not sum to 1"
    assert bool(jnp.all((out2 > 0.0).sum(-1) == top_k)), "wrong number of active experts"
    assert bool(jnp.all((idx2 >= 0) & (idx2 < num_experts))), "index out of range"
    nz_mask = out2 > 0.0
    sel_mask = jax.vmap(lambda m, i: m.at[i].set(True))(
        jnp.zeros_like(nz_mask), idx2)
    assert bool(jnp.all(nz_mask == sel_mask)), "nonzero probs do not match returned indices"

    print("KERNEL_OK")
</pallas_src>

<mosaic_0001>
module attributes {stable_mosaic.version = 11 : i64} {
  func.func @_router_kernel(%arg0: i32, %arg1: memref<16x32xf32, #tpu.memory_space<vmem>>, %arg2: memref<32x256xbf16, #tpu.memory_space<vmem>>, %arg3: memref<1x256xf32, #tpu.memory_space<vmem>>, %arg4: memref<16x8xf32, #tpu.memory_space<vmem>>, %arg5: memref<16x8xf32, #tpu.memory_space<vmem>>, %arg6: memref<16x2xi32, #tpu.memory_space<vmem>>) attributes {dimension_semantics = [#tpu.dimension_semantics<parallel>], iteration_bounds = array<i64: 1>, scalar_prefetch = 0 : i64, scratch_operands = 0 : i64, tpu.core_type = #tpu.core_type<tc>, window_params = [{transform_indices = @transform_0, window_bounds = array<i64: 16, 32>}, {pipeline_mode = #tpu.pipeline_mode<synchronous>, transform_indices = @transform_1, window_bounds = array<i64: 32, 256>}, {pipeline_mode = #tpu.pipeline_mode<synchronous>, transform_indices = @transform_2, window_bounds = array<i64: 1, 256>}, {transform_indices = @transform_3, window_bounds = array<i64: 16, 8>}, {transform_indices = @transform_4, window_bounds = array<i64: 16, 8>}, {transform_indices = @transform_5, window_bounds = array<i64: 16, 2>}]} {
    %c0 = arith.constant 0 : index
    %c0_0 = arith.constant 0 : index
    %0 = vector.load %arg1[%c0, %c0_0] : memref<16x32xf32, #tpu.memory_space<vmem>>, vector<16x32xf32>
    %1 = arith.truncf %0 : vector<16x32xf32> to vector<16x32xbf16>
    %c0_1 = arith.constant 0 : index
    %c0_2 = arith.constant 0 : index
    %2 = vector.load %arg2[%c0_1, %c0_2] : memref<32x256xbf16, #tpu.memory_space<vmem>>, vector<32x256xbf16>
    %cst = arith.constant dense<0.000000e+00> : vector<16x256xf32>
    %3 = tpu.matmul %1, %2, %cst {dimension_numbers = #tpu.dot_dimension_numbers<[1], [0], [0], [1], [0, 0, 1, 1], [], []>} : vector<16x32xbf16>, vector<32x256xbf16>, vector<16x256xf32> -> vector<16x256xf32>
    %4 = vector.extract_strided_slice %3 {offsets = [0, 0], sizes = [16, 8], strides = [1, 1]} : vector<16x256xf32> to vector<16x8xf32>
    %c0_3 = arith.constant 0 : index
    %c0_4 = arith.constant 0 : index
    %5 = vector.load %arg3[%c0_3, %c0_4] : memref<1x256xf32, #tpu.memory_space<vmem>>, vector<1x8xf32>
    %6 = vector.broadcast %5 : vector<1x8xf32> to vector<16x8xf32>
    %7 = arith.addf %4, %6 : vector<16x8xf32>
    %8 = vector.extract_strided_slice %3 {offsets = [0, 128], sizes = [16, 8], strides = [1, 1]} : vector<16x256xf32> to vector<16x8xf32>
    %c0_5 = arith.constant 0 : index
    %c128 = arith.constant 128 : index
    %9 = vector.load %arg3[%c0_5, %c128] : memref<1x256xf32, #tpu.memory_space<vmem>>, vector<1x8xf32>
    %10 = vector.broadcast %9 : vector<1x8xf32> to vector<16x8xf32>
    %11 = arith.addf %8, %10 : vector<16x8xf32>
    %c0_6 = arith.constant 0 : index
    %c0_7 = arith.constant 0 : index
    %12 = vector.load %arg4[%c0_6, %c0_7] : memref<16x8xf32, #tpu.memory_space<vmem>>, vector<16x8xf32>
    %cst_8 = arith.constant 0.000000e+00 : f32
    %13 = vector.broadcast %cst_8 : f32 to vector<16x8xf32>
    %14 = arith.maximumf %11, %13 : vector<16x8xf32>
    %15 = math.absf %11 : vector<16x8xf32>
    %cst_9 = arith.constant 0.000000e+00 : f32
    %16 = vector.broadcast %cst_9 : f32 to vector<16x8xf32>
    %17 = arith.subf %16, %15 : vector<16x8xf32>
    %18 = math.exp %17 : vector<16x8xf32>
    %19 = math.log1p %18 : vector<16x8xf32>
    %20 = arith.addf %14, %19 : vector<16x8xf32>
    %21 = arith.mulf %12, %20 : vector<16x8xf32>
    %22 = arith.addf %7, %21 : vector<16x8xf32>
    %23 = tpu.iota {dimensions = array<i32: 1>} : vector<16x8xi32>
    %cst_10 = arith.constant dense<0xFF800000> : vector<16xf32>
    %24 = vector.multi_reduction <maximumf>, %22, %cst_10 [1] : vector<16x8xf32> to vector<16xf32>
    %25 = vector.shape_cast %24 : vector<16xf32> to vector<16x1xf32>
    %26 = vector.broadcast %25 : vector<16x1xf32> to vector<16x8xf32>
    %27 = arith.cmpf oeq, %22, %26 : vector<16x8xf32>
    %c8_i32 = arith.constant 8 : i32
    %28 = vector.broadcast %c8_i32 : i32 to vector<16x8xi32>
    %29 = arith.select %27, %23, %28 : vector<16x8xi1>, vector<16x8xi32>
    %cst_11 = arith.constant dense<2147483647> : vector<16xi32>
    %30 = vector.multi_reduction <minsi>, %29, %cst_11 [1] : vector<16x8xi32> to vector<16xi32>
    %31 = vector.shape_cast %30 : vector<16xi32> to vector<16x1xi32>
    %32 = vector.broadcast %31 : vector<16x1xi32> to vector<16x8xi32>
    %33 = arith.cmpi eq, %23, %32 : vector<16x8xi32>
    %cst_12 = arith.constant 0xFF800000 : f32
    %34 = vector.broadcast %cst_12 : f32 to vector<16x8xf32>
    %35 = arith.select %33, %34, %22 : vector<16x8xi1>, vector<16x8xf32>
    %cst_13 = arith.constant dense<0xFF800000> : vector<16xf32>
    %36 = vector.multi_reduction <maximumf>, %35, %cst_13 [1] : vector<16x8xf32> to vector<16xf32>
    %37 = vector.shape_cast %36 : vector<16xf32> to vector<16x1xf32>
    %38 = vector.broadcast %37 : vector<16x1xf32> to vector<16x8xf32>
    %39 = arith.cmpf oeq, %35, %38 : vector<16x8xf32>
    %c8_i32_14 = arith.constant 8 : i32
    %40 = vector.broadcast %c8_i32_14 : i32 to vector<16x8xi32>
    %41 = arith.select %39, %23, %40 : vector<16x8xi1>, vector<16x8xi32>
    %cst_15 = arith.constant dense<2147483647> : vector<16xi32>
    %42 = vector.multi_reduction <minsi>, %41, %cst_15 [1] : vector<16x8xi32> to vector<16xi32>
    %43 = vector.shape_cast %42 : vector<16xi32> to vector<16x1xi32>
    %cst_16 = arith.constant 1.000000e+00 : f32
    %44 = vector.broadcast %cst_16 : f32 to vector<16x1xf32>
    %45 = arith.subf %37, %25 : vector<16x1xf32>
    %46 = math.exp %45 : vector<16x1xf32>
    %47 = arith.addf %44, %46 : vector<16x1xf32>
    %cst_17 = arith.constant 1.000000e+00 : f32
    %48 = vector.broadcast %cst_17 : f32 to vector<16x1xf32>
    %49 = arith.divf %48, %47 : vector<16x1xf32>
    %cst_18 = arith.constant 0.000000e+00 : f32
    %50 = vector.broadcast %cst_18 : f32 to vector<16x8xf32>
    %51 = vector.broadcast %31 : vector<16x1xi32> to vector<16x8xi32>
    %52 = arith.cmpi eq, %23, %51 : vector<16x8xi32>
    %53 = arith.mulf %44, %49 : vector<16x1xf32>
    %54 = vector.shape_cast %53 : vector<16x1xf32> to vector<16x1xf32>
    %55 = vector.broadcast %54 : vector<16x1xf32> to vector<16x8xf32>
    %56 = arith.select %52, %55, %50 : vector<16x8xi1>, vector<16x8xf32>
    %57 = vector.broadcast %43 : vector<16x1xi32> to vector<16x8xi32>
    %58 = arith.cmpi eq, %23, %57 : vector<16x8xi32>
    %59 = arith.mulf %46, %49 : vector<16x1xf32>
    %60 = vector.shape_cast %59 : vector<16x1xf32> to vector<16x1xf32>
    %61 = vector.broadcast %60 : vector<16x1xf32> to vector<16x8xf32>
    %62 = arith.select %58, %61, %56 : vector<16x8xi1>, vector<16x8xf32>
    %c0_19 = arith.constant 0 : index
    %c0_20 = arith.constant 0 : index
    %63 = vector.load %arg5[%c0_19, %c0_20] : memref<16x8xf32, #tpu.memory_space<vmem>>, vector<16x8xf32>
    tpu.vector_store %arg5[%c0_19, %c0_20], %62 {strides = array<i32>} : memref<16x8xf32, #tpu.memory_space<vmem>>, vector<16x8xf32>,
    %64 = tpu.concatenate %31, %43 in 1 : vector<16x1xi32>, vector<16x1xi32> -> vector<16x2xi32>
    %c0_21 = arith.constant 0 : index
    %c0_22 = arith.constant 0 : index
    %65 = vector.load %arg6[%c0_21, %c0_22] : memref<16x2xi32, #tpu.memory_space<vmem>>, vector<16x2xi32>
    tpu.vector_store %arg6[%c0_21, %c0_22], %64 {strides = array<i32>} : memref<16x2xi32, #tpu.memory_space<vmem>>, vector<16x2xi32>,
    return
  }
  func.func @transform_0(%arg0: i32) -> (i32, i32) {
    %c0_i32 = arith.constant 0 : i32
    %c0_i32_0 = arith.constant 0 : i32
    return %arg0, %c0_i32 : i32, i32
  }
  func.func @transform_1(%arg0: i32) -> (i32, i32) {
    %c0_i32 = arith.constant 0 : i32
    %c0_i32_0 = arith.constant 0 : i32
    %c0_i32_1 = arith.constant 0 : i32
    return %c0_i32, %c0_i32_0 : i32, i32
  }
  func.func @transform_2(%arg0: i32) -> (i32, i32) {
    %c0_i32 = arith.constant 0 : i32
    %c0_i32_0 = arith.constant 0 : i32
    %c0_i32_1 = arith.constant 0 : i32
    return %c0_i32, %c0_i32_0 : i32, i32
  }
  func.func @transform_3(%arg0: i32) -> (i32, i32) {
    %c0_i32 = arith.constant 0 : i32
    %c0_i32_0 = arith.constant 0 : i32
    return %arg0, %c0_i32 : i32, i32
  }
  func.func @transform_4(%arg0: i32) -> (i32, i32) {
    %c0_i32 = arith.constant 0 : i32
    %c0_i32_0 = arith.constant 0 : i32
    return %arg0, %c0_i32 : i32, i32
  }
  func.func @transform_5(%arg0: i32) -> (i32, i32) {
    %c0_i32 = arith.constant 0 : i32
    %c0_i32_0 = arith.constant 0 : i32
    return %arg0, %c0_i32 : i32, i32
  }
}

</mosaic_0001>

<bundles_post_ra>
// kernel: tpu_custom_call.1
= control target key start
LH: loop header
LB: loop body
LE: loop exit
PB: predicated region body
PF: predicated region fallthrough
CT: control target
= control target key end

     0   :  { %11 = vsyncpa [#allocation3], 0  ;;  %s343_s18 = smov [#allocation2]   ;;  %s471_s0 = inlined_call_operand.vmem [shape: f32[16,32], index: 0, kind: input, shape index: {}]   ;;  %s472_s1 = inlined_call_operand.hbm [shape: bf16[32,256], index: 1, kind: input, shape index: {}]   ;;  %s473_s2 = inlined_call_operand.vmem [shape: f32[1,256], index: 2, kind: input, shape index: {}]   ;;  %s474_s3 = inlined_call_operand.vmem [shape: f32[16,8], index: 3, kind: input, shape index: {}]   ;;  %s475_s4 = inlined_call_operand.vmem [shape: f32[16,8], index: 4, kind: output, shape index: {0}]   ;;  %s476_s5 = inlined_call_operand.vmem [shape: s32[16,2], index: 5, kind: output, shape index: {1}]  }
   0x1   :  { %s19_s19 = sshll.u32 %s343_s18, 4  ;;  %s319_s22 = scalar_lea.hbm %s472_s1, 512  ;;  %s20_s19 = int_to_ptr.vmem [resolvable:$true] %s19_s19 }
   0x2   :  { %p320_p0 = scmp.ne.s32.totalorder %s472_s1, %s319_s22  ;;  %p323_p1 = scmp.lt.u32.totalorder %s319_s22, %s472_s1 }
   0x4   :  { %p325_p2 = pnand %p323_p1, %p320_p0 }
   0x6   :  { %328 = shalt.err (!%p325_p2)
}
   0x7   :  { %s329_s27 = scalar_lea.vmem %s20_s19, 512  ;;  %p334_p4 = scmp.lt.s32.totalorder %s20_s19, %s20_s19 }
   0x8   :  { %p330_p3 = scmp.ne.s32.totalorder %s20_s19, %s329_s27  ;;  %p335_p5 = scmp.lt.s32.totalorder %s329_s27, %s329_s27 }
   0xa   :  { %p336_p6 = por %p335_p5, %p334_p4 }
   0xc   :  { %p337_p7 = pnand %p336_p6, %p330_p3 }
   0xe   :  { %340 = shalt.err (!%p337_p7)
}
   0xf   :  { %s344_s28 = smov 128   ;;  %s345_s29 = smov 8  }
  0x10   :  { %25 = dma.hbm_to_vmem [thread:$0]  %s472_s1, 512, %s20_s19, [#allocation3], %s344_s28, %s344_s28, %s345_s29  }
  0x11   :  { %341 = dma.done.wait [#allocation3], 512  }
  0x12   :  { %342 = vsyncadd [#allocation3], 4294966784  ;;  %v346_v0 = vmov 0   ;;  %v297_v1 = vld [vmem:[#allocation2 + $0x4] ss:$8 sps:$4 sm:$0xff]   ;;  %vm61_vm0 = vcmask 261120   ;;  %v162_v54 = vlaneseq }
  0x13   :  { %97 = vmatprep.mubr.bf16.mxu0 %v346_v0  ;;  %v299_v2 = vld [vmem:[#allocation2] ss:$8 sps:$4 sm:$0xff]   ;;  %65 = vmatprep.subr.bf16.mxu0 %v297_v1  ;;  %v300_v3 = vld [vmem:[#allocation2 + $0x14] ss:$8 sps:$4 sm:$0xff]   ;;  %v302_v4 = vld [vmem:[#allocation2 + $0x10] ss:$8 sps:$4 sm:$0xff]  }
  0x14   :  { %66 = vmatpush1.bf16.msra.mxu0 %v299_v2  ;;  %v34_v5 = vld [vmem:[%s471_s0] sm:$0xff]  ;;  %v35_v6 = vld [vmem:[%s471_s0 + $0x8] sm:$0xff]  ;;  %vm164_vm3 = vcmask 64512   ;;  %v409_v55 = vand.u32 127, %v162_v54  ;;  %vm271_vm14 = vcmask 7168   ;;  %vm274_vm15 = vcmask 15360  }
  0x15   :  { %67 = vmatprep.subr.bf16.mxu0 %v300_v3  ;;  %v36_v7 = vpack.c.bf16 %v35_v6, %v34_v5  ;;  %v292_v8 = vld [vmem:[%s473_s2 + $0x1] ss:$0 sm:$0xff]  ;;  %v291_v36 = vld [vmem:[%s473_s2] ss:$0 sm:$0xff]  ;;  %v127_v43 = vld [vmem:[%s474_s3 + $0x8] sm:$0xff] }
  0x16   :  { %v126_v40 = vld [vmem:[%s474_s3] sm:$0xff] }
  0x18   :  { %68 = vmatpush1.bf16.msra.mxu0 %v302_v4 }
  0x1b   :  { %290 = vmatmul.mubr.msk.bf16.vlgmr.msra.gmra.mrb[0].mxu0 %vm61_vm0, %v36_v7 }
  0xee   :  { %v99_v9 = vpop.f32.mrb[0].mxu0 }
  0xef   :  { %v101_v10 = vpop.f32.mrb[1].mxu0  ;;  %v115_v45 = vadd.f32 %v291_v36, %v99_v9 }
  0xf0   :  { %v124_v11 = vadd.f32 %v292_v8, %v101_v10  ;;  %v103_v12 = vpop.f32.mrb[2].mxu0 }
  0xf1   :  { %v105_v13 = vpop.f32.mrb[3].mxu0  ;;  %v116_v48 = vadd.f32 %v291_v36, %v103_v12 }
  0xf2   :  { %v130_v14 = vand.u32 2147483647, %v124_v11  ;;  %v125_v15 = vadd.f32 %v292_v8, %v105_v13  ;;  %v128_v35 = vmax.f32 %v124_v11, 0.0 }
  0xf4   :  { %v132_v16 = vsub.f32 0.0, %v130_v14  ;;  %v131_v17 = vand.u32 2147483647, %v125_v15  ;;  %v129_v42 = vmax.f32 %v125_v15, 0.0 }
  0xf6   :  { %v134_v18 = vmul.f32 1.442695, %v132_v16  ;;  %v133_v19 = vsub.f32 0.0, %v131_v17 }
  0xf8   :  { %303 = vpow2.f32 %v134_v18  ;;  %v136_v20 = vmul.f32 1.442695, %v133_v19 }
  0xfa   :  { %305 = vpow2.f32 %v136_v20 }
 0x102   :  { %v304_v21 = vpop.eup %303 }
 0x103   :  { %v138_v22 = vadd.f32 1.0, %v304_v21  ;;  %v141_v25 = vmul.f32 -0.5, %v304_v21  ;;  %v144_v28 = vand.u32 2147483647, %v304_v21 }
 0x104   :  { %v306_v23 = vpop.eup %305 }
 0x105   :  { %307 = vlog2.f32 %v138_v22  ;;  %v147_v24 = vadd.f32 1.0, %v306_v23  ;;  %v150_v26 = vmul.f32 -0.5, %v306_v23  ;;  %v142_v27 = vadd.f32 1.0, %v141_v25 }
 0x106   :  { %v153_v31 = vand.u32 2147483647, %v306_v23  ;;  %vm145_vm1 = vcmp.lt.f32.partialorder %v144_v28, 0.0004427343 }
 0x107   :  { %309 = vlog2.f32 %v147_v24  ;;  %v151_v29 = vadd.f32 1.0, %v150_v26  ;;  %v143_v33 = vmul.f32 %v304_v21, %v142_v27 }
 0x108   :  { %vm154_vm2 = vcmp.lt.f32.partialorder %v153_v31, 0.0004427343 }
 0x109   :  { %v152_v39 = vmul.f32 %v306_v23, %v151_v29 }
 0x10f   :  { %v308_v30 = vpop.eup %307 }
 0x110   :  { %v140_v32 = vmul.f32 0.6931472, %v308_v30 }
 0x111   :  { %v310_v34 = vpop.eup %309 }
 0x112   :  { %v146_v37 = vsel %vm145_vm1, %v143_v33, %v140_v32  ;;  %v149_v38 = vmul.f32 0.6931472, %v310_v34 }
 0x113   :  { %v156_v41 = vadd.f32 %v146_v37, %v128_v35 }
 0x114   :  { %v155_v44 = vsel %vm154_vm2, %v152_v39, %v149_v38 }
 0x115   :  { %v157_v46 = vadd.f32 %v155_v44, %v129_v42  ;;  %v158_v47 = vmul.f32 %v156_v41, %v126_v40 }
 0x117   :  { %v159_v49 = vmul.f32 %v157_v46, %v127_v43  ;;  %v160_v50 = vadd.f32 %v158_v47, %v115_v45 }
 0x119   :  { %v165_v51 = vsel %vm164_vm3, %v160_v50, -inf  ;;  %v161_v52 = vadd.f32 %v159_v49, %v116_v48 }
 0x11a   :  { %166 = vmax.xlane.f32.xlu0 %v165_v51 }
 0x11b   :  { %v168_v53 = vsel %vm164_vm3, %v161_v52, -inf }
 0x11e   :  { %169 = vmax.xlane.f32.xlu0 %v168_v53 }
 0x1a7   :  { %v411_v56 = vpop.xlane.xlu0 %166 }
 0x1a8   :  { %vm171_vm4 = vcmp.eq.f32.partialorder %v160_v50, %v411_v56 }
 0x1a9   :  { %v173_v57 = vsel %vm171_vm4, %v409_v55, 8 }
 0x1aa   :  { %v175_v58 = vsel %vm164_vm3, %v173_v57, 2147483647 }
 0x1ab   :  { %v416_v59 = vpop.xlane.xlu0 %169  ;;  %v177_v60 = vshra.s32 %v175_v58, 16  ;;  %v176_v2 = vand.u32 65535, %v175_v58 }
 0x1ac   :  { %vm172_vm5 = vcmp.eq.f32.partialorder %v161_v52, %v416_v59 }
 0x1ad   :  { %v174_v61 = vsel %vm172_vm5, %v409_v55, 8  ;;  %v179_v62 = vcvt.s32.f32 %v177_v60  ;;  %v178_v4 = vcvt.s32.f32 %v176_v2 }
 0x1ae   :  { %v190_v63 = vsel %vm164_vm3, %v174_v61, 2147483647 }
 0x1af   :  { %180 = vmin.xlane.f32.xlu1 %v179_v62  ;;  %v192_v0 = vshra.s32 %v190_v63, 16  ;;  %v191_v5 = vand.u32 65535, %v190_v63 }
 0x1b1   :  { %v194_v1 = vcvt.s32.f32 %v192_v0  ;;  %v193_v8 = vcvt.s32.f32 %v191_v5 }
 0x1b3   :  { %195 = vmin.xlane.f32.xlu1 %v194_v1 }
 0x23c   :  { %v181_v3 = vpop.xlane.xlu1 %180 }
 0x23d   :  { %vm182_vm6 = vcmp.eq.f32.partialorder %v179_v62, %v181_v3  ;;  %v187_v10 = vcvt.f32.s32 %v181_v3 }
 0x23e   :  { %v183_v6 = vsel %vm182_vm6, %v178_v4, inf }
 0x23f   :  { %184 = vmin.xlane.f32.xlu0 %v183_v6  ;;  %v188_v12 = vshll.u32 %v187_v10, 16 }
 0x240   :  { %v196_v7 = vpop.xlane.xlu1 %195 }
 0x241   :  { %vm197_vm7 = vcmp.eq.f32.partialorder %v194_v1, %v196_v7  ;;  %v202_v13 = vcvt.f32.s32 %v196_v7 }
 0x242   :  { %v198_v9 = vsel %vm197_vm7, %v193_v8, inf }
 0x243   :  { %199 = vmin.xlane.f32.xlu1 %v198_v9  ;;  %v203_v17 = vshll.u32 %v202_v13, 16 }
 0x2cc   :  { %v185_v11 = vpop.xlane.xlu0 %184 }
 0x2cd   :  { %v186_v14 = vcvt.f32.s32 %v185_v11 }
 0x2cf   :  { %v421_v15 = vadd.s32 %v188_v12, %v186_v14 }
 0x2d0   :  { %v200_v16 = vpop.xlane.xlu1 %199 }
 0x2d1   :  { %v201_v18 = vcvt.f32.s32 %v200_v16  ;;  %vm205_vm8 = vcmp.eq.s32.totalorder %v409_v55, %v421_v15 }
 0x2d2   :  { %v207_v19 = vsel %vm205_vm8, -inf, %v160_v50 }
 0x2d3   :  { %v428_v20 = vadd.s32 %v203_v17, %v201_v18  ;;  %v209_v21 = vsel %vm164_vm3, %v207_v19, -inf }
 0x2d4   :  { %210 = vmax.xlane.f32.xlu0 %v209_v21 }
 0x2d5   :  { %vm206_vm9 = vcmp.eq.s32.totalorder %v409_v55, %v428_v20 }
 0x2d6   :  { %v208_v22 = vsel %vm206_vm9, -inf, %v161_v52 }
 0x2d7   :  { %v212_v23 = vsel %vm164_vm3, %v208_v22, -inf }
 0x2d8   :  { %213 = vmax.xlane.f32.xlu1 %v212_v23 }
 0x361   :  { %v211_v24 = vpop.xlane.xlu0 %210 }
 0x362   :  { %vm215_vm10 = vcmp.eq.f32.partialorder %v207_v19, %v211_v24  ;;  %v249_v42 = vsub.f32 %v211_v24, %v411_v56 }
 0x363   :  { %v217_v25 = vsel %vm215_vm10, %v409_v55, 8 }
 0x364   :  { %v219_v26 = vsel %vm164_vm3, %v217_v25, 2147483647  ;;  %v251_v43 = vmul.f32 1.442695, %v249_v42 }
 0x365   :  { %v214_v27 = vpop.xlane.xlu1 %213  ;;  %v221_v28 = vshra.s32 %v219_v26, 16  ;;  %v220_v34 = vand.u32 65535, %v219_v26 }
 0x366   :  { %vm216_vm11 = vcmp.eq.f32.partialorder %v208_v22, %v214_v27  ;;  %v250_v44 = vsub.f32 %v214_v27, %v416_v59  ;;  %311 = vpow2.f32 %v251_v43 }
 0x367   :  { %v218_v29 = vsel %vm216_vm11, %v409_v55, 8  ;;  %v223_v30 = vcvt.s32.f32 %v221_v28  ;;  %v222_v36 = vcvt.s32.f32 %v220_v34 }
 0x368   :  { %v234_v31 = vsel %vm164_vm3, %v218_v29, 2147483647  ;;  %v253_v45 = vmul.f32 1.442695, %v250_v44 }
 0x369   :  { %224 = vmin.xlane.f32.xlu0 %v223_v30  ;;  %v236_v32 = vshra.s32 %v234_v31, 16  ;;  %v235_v37 = vand.u32 65535, %v234_v31 }
 0x36a   :  { %313 = vpow2.f32 %v253_v45 }
 0x36b   :  { %v238_v33 = vcvt.s32.f32 %v236_v32  ;;  %v237_v40 = vcvt.s32.f32 %v235_v37 }
 0x36d   :  { %239 = vmin.xlane.f32.xlu1 %v238_v33 }
 0x370   :  { %v312_v46 = vpop.eup %311 }
 0x371   :  { %v255_v47 = vadd.f32 1.0, %v312_v46 }
 0x373   :  { %315 = vrcp.f32 %v255_v47 }
 0x374   :  { %v314_v48 = vpop.eup %313 }
 0x375   :  { %v256_v49 = vadd.f32 1.0, %v314_v48 }
 0x377   :  { %317 = vrcp.f32 %v256_v49 }
 0x37d   :  { %v316_v52 = vpop.eup %315 }
 0x37e   :  { %v261_v58 = vsel %vm205_vm8, %v316_v52, 0.0  ;;  %v265_v59 = vmul.f32 %v316_v52, %v312_v46 }
 0x381   :  { %v318_v61 = vpop.eup %317 }
 0x382   :  { %v266_v3 = vmul.f32 %v318_v61, %v314_v48  ;;  %v262_v4 = vsel %vm206_vm9, %v318_v61, 0.0 }
 0x3f6   :  { %v225_v35 = vpop.xlane.xlu0 %224 }
 0x3f7   :  { %vm226_vm12 = vcmp.eq.f32.partialorder %v223_v30, %v225_v35  ;;  %v231_v50 = vcvt.f32.s32 %v225_v35 }
 0x3f8   :  { %v227_v38 = vsel %vm226_vm12, %v222_v36, inf }
 0x3f9   :  { %228 = vmin.xlane.f32.xlu0 %v227_v38  ;;  %v232_v53 = vshll.u32 %v231_v50, 16 }
 0x3fa   :  { %v240_v39 = vpop.xlane.xlu1 %239 }
 0x3fb   :  { %vm241_vm13 = vcmp.eq.f32.partialorder %v238_v33, %v240_v39  ;;  %v246_v54 = vcvt.f32.s32 %v240_v39 }
 0x3fc   :  { %v242_v41 = vsel %vm241_vm13, %v237_v40, inf }
 0x3fd   :  { %243 = vmin.xlane.f32.xlu1 %v242_v41  ;;  %v247_v62 = vshll.u32 %v246_v54, 16 }
 0x486   :  { %v229_v51 = vpop.xlane.xlu0 %228 }
 0x487   :  { %v230_v57 = vcvt.f32.s32 %v229_v51 }
 0x489   :  { %v233_v56 = vadd.s32 %v232_v53, %v230_v57 }
 0x48a   :  { %v244_v60 = vpop.xlane.xlu1 %243 }
 0x48b   :  { %vm263_vm0 = vcmp.eq.s32.totalorder %v409_v55, %v233_v56  ;;  %v272_v63 = vsel %vm271_vm14, %v421_v15, %v233_v56  ;;  %v245_v0 = vcvt.f32.s32 %v244_v60 }
 0x48c   :  { %v267_v1 = vsel %vm263_vm0, %v265_v59, %v261_v58  ;;  %275 = vst.msk [vmem:[%s476_s5] sm:$0xff] %vm274_vm15, %v272_v63 }
 0x48d   :  { %269 = vst.msk [vmem:[%s475_s4] sm:$0xff] %vm164_vm3, %v267_v1  ;;  %v248_v2 = vadd.s32 %v247_v62, %v245_v0 }
 0x48f   :  { %vm264_vm1 = vcmp.eq.s32.totalorder %v409_v55, %v248_v2  ;;  %v273_v5 = vsel %vm271_vm14, %v428_v20, %v248_v2 }
 0x490   :  { %v268_v6 = vsel %vm264_vm1, %v266_v3, %v262_v4  ;;  %276 = vst.msk [vmem:[%s476_s5 + $0x8] sm:$0xff] %vm274_vm15, %v273_v5 }
 0x491   :  { %270 = vst.msk [vmem:[%s475_s4 + $0x8] sm:$0xff] %vm164_vm3, %v268_v6 }
 0x492   :  { %285 = vsyncpa [#allocation3], 1 }

</bundles_post_ra>
